<compile_context>
chip_gen: v7x
topology: tpu7x:2x2x1
jax: 0.10.0
libtpu: 0.0.40
codegen_flags: <defaults>
</compile_context>

<pallas_src>
import math

import jax
import jax.numpy as jnp
from jax.experimental import pallas as pl
from jax.experimental.pallas import tpu as pltpu


def _copy_kernel(x_ref, o_ref):
    # Whole-tile load/store; with a lane-dense block (last dim a multiple of
    # 128) this lowers to full-width, unmasked vld/vst pairs.
    o_ref[...] = x_ref[...]


# Per-tile byte budget.  Input + output, each double-buffered => ~4x this is
# resident in VMEM, which stays well inside the default scoped limits on
# v5e (16 MiB) / v6e (32 MiB) / v7x (32 MiB of 64 MiB physical).
_TILE_BYTES_TARGET = 2 * 1024 * 1024
_VMEM_LIMIT_BYTES = 32 * 1024 * 1024


def _choose_layout(total_elems, itemsize):
    """Pick a lane-dense 2-D slab (rows, lane) and a row tile for pipelining."""
    lane = None
    for cand in (2048, 1024, 512, 256, 128):   # last dim: large multiple of 128
        if total_elems % cand == 0:
            lane = cand
            break
    if lane is None:
        return None
    rows = total_elems // lane

    # dtype-aware sublane packing minimum: 8 rows (f32), 16 (bf16), 32 (int8).
    sublane_min = max(8, 32 // itemsize)

    max_rows = max(1, _TILE_BYTES_TARGET // (lane * itemsize))
    if rows <= max_rows:
        row_tile = rows          # single block == full array dim -> always legal
    else:
        row_tile = None
        cand = (max_rows // sublane_min) * sublane_min
        while cand >= sublane_min:
            if rows % cand == 0:
                row_tile = cand
                break
            cand -= sublane_min
        if row_tile is None:
            # TODO(synk): pathological row count with no aligned divisor; fall
            # back to a single full block (may need a larger VMEM limit).
            row_tile = rows
    return rows, lane, row_tile


@jax.jit
def base_model_forward(x):
    """Identity forward (BaseModel.forward is abstract).

    The N-D input is flattened into a lane-dense 2-D slab (rows, lane) whose
    last dim is a multiple of 128 (no relation to the PyTorch NCHW axes — this
    is purely a TPU layout choice), then copied tile-by-tile through VMEM over
    a 1-D 'parallel' grid on the row axis (so v7x shards it across its two
    TensorCores).  Output is reshaped back to the original shape.
    """
    orig_shape = x.shape
    itemsize = jnp.dtype(x.dtype).itemsize
    total = math.prod(orig_shape) if orig_shape else 1

    cost = pl.CostEstimate(
        flops=0, transcendentals=0, bytes_accessed=2 * total * itemsize)

    layout = _choose_layout(total, itemsize)

    if layout is None:
        # TODO(synk): element count not a multiple of 128; correct but
        # unpipelined single-block fallback (not lane-dense).
        x2d = x.reshape(1, total)
        out2d = pl.pallas_call(
            _copy_kernel,
            out_shape=jax.ShapeDtypeStruct(x2d.shape, x2d.dtype),
            grid_spec=pl.GridSpec(
                grid=(1,),
                in_specs=[pl.BlockSpec(x2d.shape, lambda i: (0, 0))],
                out_specs=pl.BlockSpec(x2d.shape, lambda i: (0, 0)),
            ),
            compiler_params=pltpu.CompilerParams(
                dimension_semantics=("arbitrary",),
                vmem_limit_bytes=_VMEM_LIMIT_BYTES,
            ),
            input_output_aliases={0: 0},
            cost_estimate=cost,
        )(x2d)
        return out2d.reshape(orig_shape)

    rows, lane, row_tile = layout
    x2d = x.reshape(rows, lane)

    out2d = pl.pallas_call(
        _copy_kernel,
        out_shape=jax.ShapeDtypeStruct((rows, lane), x.dtype),
        grid_spec=pl.GridSpec(
            grid=(rows // row_tile,),
            in_specs=[pl.BlockSpec((row_tile, lane), lambda i: (i, 0))],
            out_specs=pl.BlockSpec((row_tile, lane), lambda i: (i, 0)),
        ),
        compiler_params=pltpu.CompilerParams(
            dimension_semantics=("parallel",),
            vmem_limit_bytes=_VMEM_LIMIT_BYTES,
        ),
        input_output_aliases={0: 0},   # identity: reuse the input HBM buffer
        cost_estimate=cost,
    )(x2d)
    return out2d.reshape(orig_shape)


if __name__ == "__main__":
    key = jax.random.PRNGKey(0)
    # Small NCHW input consistent with an image-to-image BaseModel subclass.
    x = jax.random.normal(key, (2, 4, 16, 16), dtype=jnp.float32)

    y = jax.block_until_ready(base_model_forward(x))

    # Sanity: identity semantics (abstract forward -> pass-through).
    assert y.shape == x.shape and y.dtype == x.dtype
    assert bool(jnp.allclose(y, x))

    print("KERNEL_OK")
</pallas_src>

<mosaic_0001>
module attributes {stable_mosaic.version = 11 : i64} {
  func.func @_copy_kernel(%arg0: i32, %arg1: memref<1x2048xf32, #tpu.memory_space<vmem>>, %arg2: memref<1x2048xf32, #tpu.memory_space<vmem>>) attributes {dimension_semantics = [#tpu.dimension_semantics<parallel>], iteration_bounds = array<i64: 1>, scalar_prefetch = 0 : i64, scratch_operands = 0 : i64, tpu.core_type = #tpu.core_type<tc>, window_params = [{transform_indices = @transform_0, window_bounds = array<i64: 1, 2048>}, {transform_indices = @transform_1, window_bounds = array<i64: 1, 2048>}]} {
    %c0 = arith.constant 0 : index
    %c0_0 = arith.constant 0 : index
    %0 = vector.load %arg1[%c0, %c0_0] : memref<1x2048xf32, #tpu.memory_space<vmem>>, vector<1x2048xf32>
    %c0_1 = arith.constant 0 : index
    %c0_2 = arith.constant 0 : index
    %1 = vector.load %arg2[%c0_1, %c0_2] : memref<1x2048xf32, #tpu.memory_space<vmem>>, vector<1x2048xf32>
    tpu.vector_store %arg2[%c0_1, %c0_2], %0 {strides = array<i32>} : memref<1x2048xf32, #tpu.memory_space<vmem>>, vector<1x2048xf32>,
    return
  }
  func.func @transform_0(%arg0: i32) -> (i32, i32) {
    %c0_i32 = arith.constant 0 : i32
    %c0_i32_0 = arith.constant 0 : i32
    return %arg0, %c0_i32 : i32, i32
  }
  func.func @transform_1(%arg0: i32) -> (i32, i32) {
    %c0_i32 = arith.constant 0 : i32
    %c0_i32_0 = arith.constant 0 : i32
    return %arg0, %c0_i32 : i32, i32
  }
}

</mosaic_0001>

<bundles_post_ra>
// kernel: base_model_forward.1
= control target key start
LH: loop header
LB: loop body
LE: loop exit
PB: predicated region body
PF: predicated region fallthrough
CT: control target
= control target key end

     0   :  { %s38_s0 = inlined_call_operand.vmem [shape: f32[1,2048], index: 0, kind: input, shape index: {}, may-alias: {0,1}]   ;;  %s39_s1 = inlined_call_operand.vmem [shape: f32[1,2048], index: 1, kind: output, shape index: {}, may-alias: {0,1}]  }
   0x1   :  { %v8_v0 = vld [vmem:[%s38_s0] sm:$0xff]  ;;  %v9_v1 = vld [vmem:[%s38_s0 + $0x8] sm:$0xff] }
   0x2   :  { %10 = vst [vmem:[%s39_s1] sm:$0xff] %v8_v0  ;;  %11 = vst [vmem:[%s39_s1 + $0x8] sm:$0xff] %v9_v1 }

</bundles_post_ra>
